<compile_context>
chip_gen: v7x
topology: tpu7x:2x2x1
jax: 0.10.0
libtpu: 0.0.40
codegen_flags: <defaults>
</compile_context>

<pallas_src>
import functools
import math

import jax
import jax.numpy as jnp
from jax.experimental import pallas as pl
from jax.experimental.pallas import tpu as pltpu


def _mha_kernel(n_heads, d_k, d_v, eps, matmul_dtype, approx_recip, return_attn,
                q_in_ref, k_in_ref, v_in_ref, mask_ref,
                wq_ref, wk_ref, wv_ref, wfc_ref, gamma_ref, beta_ref,
                *out_refs):
    if return_attn:
        out_ref, attn_ref = out_refs
    else:
        (out_ref,) = out_refs
        attn_ref = None

    Bb, L, d_model = q_in_ref.shape
    N = Bb * L
    md = matmul_dtype

    # Flatten batch+seq so each projection is one [N, d_model] @ [d_model, H*d]
    # MXU matmul.  (Free relayout when L is a multiple of 8; callers should pad
    # seq_len to a multiple of 8 for best layout.)
    xq = q_in_ref[...].reshape(N, d_model)   # f32; also used for the residual
    xk = k_in_ref[...].reshape(N, d_model)
    xv = v_in_ref[...].reshape(N, d_model)

    Q = jnp.dot(xq.astype(md), wq_ref[...], preferred_element_type=jnp.float32)
    K = jnp.dot(xk.astype(md), wk_ref[...], preferred_element_type=jnp.float32)
    V = jnp.dot(xv.astype(md), wv_ref[...], preferred_element_type=jnp.float32)

    # Fold the 1/sqrt(d_k) scale into Q once (f32), then cast for the MXU.
    Q3 = (Q * (1.0 / math.sqrt(d_k))).reshape(Bb, L, n_heads * d_k).astype(md)
    K3 = K.reshape(Bb, L, n_heads * d_k).astype(md)
    V3 = V.reshape(Bb, L, n_heads * d_v).astype(md)

    add_mask = mask_ref[...]                 # [Bb, L, L], 0 (keep) / -10000 (masked)

    y = jnp.zeros((N, d_model), jnp.float32)  # fc-output accumulator (no concat)
    for h in range(n_heads):                  # static unroll over heads
        Qh = Q3[:, :, h * d_k:(h + 1) * d_k]  # [Bb, L, d_k]
        Kh = K3[:, :, h * d_k:(h + 1) * d_k]  # [Bb, L, d_k]
        Vh = V3[:, :, h * d_v:(h + 1) * d_v]  # [Bb, L, d_v]

        # scores[b, q, k] = sum_d Qh[b, q, d] * Kh[b, k, d]   (no explicit .T)
        scores = jax.lax.dot_general(
            Qh, Kh, (((2,), (2,)), ((0,), (0,))),
            preferred_element_type=jnp.float32)               # [Bb, L, L] f32
        scores = scores + add_mask

        # numerically stable softmax (f32); reciprocal on the EUP when approx.
        m = jnp.max(scores, axis=-1, keepdims=True)
        p = jnp.exp(scores - m)
        denom = jnp.sum(p, axis=-1, keepdims=True)
        attn = p * pl.reciprocal(denom, approx=approx_recip)  # [Bb, L, L] f32

        if return_attn:
            attn_ref[:, h, :, :] = attn

        # context for this head, accumulated into its slice of the fc matmul.
        ctx = jax.lax.dot_general(
            attn.astype(md), Vh, (((2,), (1,)), ((0,), (0,))),
            preferred_element_type=jnp.float32)               # [Bb, L, d_v]
        y = y + jnp.dot(ctx.reshape(N, d_v).astype(md),
                        wfc_ref[h * d_v:(h + 1) * d_v, :],
                        preferred_element_type=jnp.float32)   # [N, d_model]

    # Residual + LayerNorm (f32, biased variance), elementwise affine.
    y = y + xq
    mu = jnp.mean(y, axis=-1, keepdims=True)
    diff = y - mu
    var = jnp.mean(diff * diff, axis=-1, keepdims=True)
    normed = diff * jax.lax.rsqrt(var + eps)
    out = normed * gamma_ref[...] + beta_ref[...]
    out_ref[...] = out.reshape(Bb, L, d_model).astype(out_ref.dtype)


def _default_batch_block(B, L, target_rows=128):
    # Smallest divisor of B whose block fills >= target_rows matmul rows
    # (keeps the grid long -> good for v7x 2-TC sharding); otherwise process
    # the whole batch in one grid step.
    for cand in range(1, B + 1):
        if B % cand == 0 and cand * L >= target_rows:
            return cand
    return B


def multi_head_attention(input_Q, input_K, input_V, attn_mask,
                         W_Q, W_K, W_V, W_fc, gamma, beta,
                         *, n_heads, d_k, d_v, eps=1e-5,
                         matmul_dtype=jnp.bfloat16, approx_recip=True,
                         return_attn=True, batch_block=None,
                         vmem_limit_bytes=None):
    """W_* in PyTorch nn.Linear convention ([out_features, in_features])."""
    B, L, d_model = input_Q.shape

    if batch_block is None:
        batch_block = _default_batch_block(B, L)
    assert B % batch_block == 0, "batch_block must divide the batch size"
    Bb = batch_block
    grid = (B // Bb,)

    md = matmul_dtype
    # Pre-transpose weights to [in, out] and cast once to the matmul dtype.
    wq_t = jnp.asarray(W_Q, jnp.float32).T.astype(md)      # [d_model, H*d_k]
    wk_t = jnp.asarray(W_K, jnp.float32).T.astype(md)      # [d_model, H*d_k]
    wv_t = jnp.asarray(W_V, jnp.float32).T.astype(md)      # [d_model, H*d_v]
    wfc_t = jnp.asarray(W_fc, jnp.float32).T.astype(md)    # [H*d_v, d_model]
    gamma2 = jnp.asarray(gamma, jnp.float32).reshape(1, d_model)
    beta2 = jnp.asarray(beta, jnp.float32).reshape(1, d_model)

    # Additive mask: 0 where kept, -10000 where masked (== masked_fill(-10000)
    # under softmax, since exp(-10000 + s) underflows to 0 exactly like exp(-10000)).
    add_mask = jnp.where(jnp.asarray(attn_mask) != 0,
                         jnp.float32(-10000.0), jnp.float32(0.0))

    kernel = functools.partial(_mha_kernel, n_heads, d_k, d_v, eps,
                               md, approx_recip, return_attn)

    out_shapes = [jax.ShapeDtypeStruct((B, L, d_model), jnp.float32)]
    out_specs = [pl.BlockSpec((Bb, L, d_model), lambda b: (b, 0, 0))]
    if return_attn:
        # NOTE: at large L this [Bb, H, L, L] f32 block dominates VMEM and HBM
        # writes (double-buffered by the pipeline); prefer return_attn=False
        # when attention weights are not consumed (esp. on v7x, 64 MiB VMEM).
        out_shapes.append(jax.ShapeDtypeStruct((B, n_heads, L, L), jnp.float32))
        out_specs.append(pl.BlockSpec((Bb, n_heads, L, L), lambda b: (b, 0, 0, 0)))

    grid_spec = pltpu.PrefetchScalarGridSpec(
        num_scalar_prefetch=0,
        grid=grid,
        in_specs=[
            pl.BlockSpec((Bb, L, d_model), lambda b: (b, 0, 0)),          # input_Q
            pl.BlockSpec((Bb, L, d_model), lambda b: (b, 0, 0)),          # input_K
            pl.BlockSpec((Bb, L, d_model), lambda b: (b, 0, 0)),          # input_V
            pl.BlockSpec((Bb, L, L), lambda b: (b, 0, 0)),                # additive mask
            pl.BlockSpec((d_model, n_heads * d_k), lambda b: (0, 0)),     # W_Q^T
            pl.BlockSpec((d_model, n_heads * d_k), lambda b: (0, 0)),     # W_K^T
            pl.BlockSpec((d_model, n_heads * d_v), lambda b: (0, 0)),     # W_V^T
            pl.BlockSpec((n_heads * d_v, d_model), lambda b: (0, 0)),     # W_fc^T
            pl.BlockSpec((1, d_model), lambda b: (0, 0)),                 # gamma
            pl.BlockSpec((1, d_model), lambda b: (0, 0)),                 # beta
        ],
        out_specs=tuple(out_specs),
    )

    results = pl.pallas_call(
        kernel,
        out_shape=tuple(out_shapes),
        grid_spec=grid_spec,
        compiler_params=pltpu.CompilerParams(
            dimension_semantics=("parallel",),    # batch axis -> v7x 2-TC sharding
            vmem_limit_bytes=vmem_limit_bytes),
    )(input_Q, input_K, input_V, add_mask,
      wq_t, wk_t, wv_t, wfc_t, gamma2, beta2)

    if return_attn:
        out, attn = results
        return out, attn
    return results[0] if isinstance(results, (tuple, list)) else results


def _reference(input_Q, input_K, input_V, attn_mask,
               W_Q, W_K, W_V, W_fc, gamma, beta, n_heads, d_k, d_v, eps=1e-5):
    B, L, D = input_Q.shape
    Q = (input_Q @ W_Q.T).reshape(B, L, n_heads, d_k).transpose(0, 2, 1, 3)
    K = (input_K @ W_K.T).reshape(B, L, n_heads, d_k).transpose(0, 2, 1, 3)
    V = (input_V @ W_V.T).reshape(B, L, n_heads, d_v).transpose(0, 2, 1, 3)
    scores = jnp.einsum("bhqd,bhkd->bhqk", Q, K) / math.sqrt(d_k)
    scores = jnp.where(attn_mask[:, None, :, :], -10000.0, scores)
    attn = jax.nn.softmax(scores, axis=-1)
    ctx = jnp.einsum("bhqk,bhkd->bhqd", attn, V).transpose(0, 2, 1, 3).reshape(B, L, n_heads * d_v)
    out = ctx @ W_fc.T + input_Q
    mu = out.mean(-1, keepdims=True)
    var = ((out - mu) ** 2).mean(-1, keepdims=True)
    return (out - mu) / jnp.sqrt(var + eps) * gamma + beta, attn


if __name__ == "__main__":
    # Small, module-consistent shapes
    B, L = 2, 8
    d_model, n_heads, d_k, d_v = 32, 4, 8, 8

    key = jax.random.PRNGKey(0)
    keys = jax.random.split(key, 8)
    input_Q = jax.random.normal(keys[0], (B, L, d_model), jnp.float32)
    input_K = jax.random.normal(keys[1], (B, L, d_model), jnp.float32)
    input_V = jax.random.normal(keys[2], (B, L, d_model), jnp.float32)

    # Mask: block out the last two key positions (True == masked), PyTorch-style bool mask.
    attn_mask = jnp.broadcast_to(jnp.arange(L)[None, :] >= L - 2, (L, L))
    attn_mask = jnp.broadcast_to(attn_mask[None], (B, L, L))

    # Deterministic nn.Linear-style [out, in] weights, no bias.
    def init_w(k, out_f, in_f):
        bound = 1.0 / math.sqrt(in_f)
        return jax.random.uniform(k, (out_f, in_f), jnp.float32, -bound, bound)

    W_Q = init_w(keys[3], n_heads * d_k, d_model)
    W_K = init_w(keys[4], n_heads * d_k, d_model)
    W_V = init_w(keys[5], n_heads * d_v, d_model)
    W_fc = init_w(keys[6], d_model, n_heads * d_v)
    gamma = jnp.ones((d_model,), jnp.float32)
    beta = jnp.zeros((d_model,), jnp.float32)

    out_ref, attn_ref = _reference(
        input_Q, input_K, input_V, attn_mask,
        W_Q, W_K, W_V, W_fc, gamma, beta, n_heads, d_k, d_v)

    # 1) Exact-precision config: f32 matmuls + exact reciprocal -> tight check.
    out_f32, attn_f32 = multi_head_attention(
        input_Q, input_K, input_V, attn_mask,
        W_Q, W_K, W_V, W_fc, gamma, beta,
        n_heads=n_heads, d_k=d_k, d_v=d_v,
        matmul_dtype=jnp.float32, approx_recip=False, return_attn=True)
    jax.block_until_ready((out_f32, attn_f32))
    assert jnp.allclose(out_f32, out_ref, atol=1e-4, rtol=1e-4)
    assert jnp.allclose(attn_f32, attn_ref, atol=1e-5, rtol=1e-5)

    # 2) Performance config (defaults): bf16 matmul operands + approx reciprocal.
    out_bf16, attn_bf16 = multi_head_attention(
        input_Q, input_K, input_V, attn_mask,
        W_Q, W_K, W_V, W_fc, gamma, beta,
        n_heads=n_heads, d_k=d_k, d_v=d_v)
    jax.block_until_ready((out_bf16, attn_bf16))
    assert jnp.allclose(out_bf16, out_ref, atol=1e-1, rtol=1e-1)
    assert jnp.allclose(attn_bf16, attn_ref, atol=5e-2, rtol=5e-2)

    # 3) Attention-weights output disabled (what callers should use when attn
    #    is not consumed downstream) -- must match the main output exactly.
    out_noattn = multi_head_attention(
        input_Q, input_K, input_V, attn_mask,
        W_Q, W_K, W_V, W_fc, gamma, beta,
        n_heads=n_heads, d_k=d_k, d_v=d_v, return_attn=False)
    jax.block_until_ready(out_noattn)
    assert jnp.allclose(out_noattn, out_bf16, atol=1e-5, rtol=1e-5)

    print("KERNEL_OK")
</pallas_src>

<mosaic_0001>
module attributes {stable_mosaic.version = 11 : i64} {
  func.func @_mha_kernel(%arg0: i32, %arg1: memref<2x8x32xf32, #tpu.memory_space<vmem>>, %arg2: memref<2x8x32xf32, #tpu.memory_space<vmem>>, %arg3: memref<2x8x32xf32, #tpu.memory_space<vmem>>, %arg4: memref<2x8x8xf32, #tpu.memory_space<vmem>>, %arg5: memref<32x32xf32, #tpu.memory_space<vmem>>, %arg6: memref<32x32xf32, #tpu.memory_space<vmem>>, %arg7: memref<32x32xf32, #tpu.memory_space<vmem>>, %arg8: memref<32x32xf32, #tpu.memory_space<vmem>>, %arg9: memref<1x32xf32, #tpu.memory_space<vmem>>, %arg10: memref<1x32xf32, #tpu.memory_space<vmem>>, %arg11: memref<2x8x32xf32, #tpu.memory_space<vmem>>, %arg12: memref<2x4x8x8xf32, #tpu.memory_space<vmem>>) attributes {dimension_semantics = [#tpu.dimension_semantics<parallel>], iteration_bounds = array<i64: 1>, scalar_prefetch = 0 : i64, scratch_operands = 0 : i64, tpu.core_type = #tpu.core_type<tc>, window_params = [{transform_indices = @transform_0, window_bounds = array<i64: 2, 8, 32>}, {transform_indices = @transform_1, window_bounds = array<i64: 2, 8, 32>}, {transform_indices = @transform_2, window_bounds = array<i64: 2, 8, 32>}, {transform_indices = @transform_3, window_bounds = array<i64: 2, 8, 8>}, {pipeline_mode = #tpu.pipeline_mode<synchronous>, transform_indices = @transform_4, window_bounds = array<i64: 32, 32>}, {pipeline_mode = #tpu.pipeline_mode<synchronous>, transform_indices = @transform_5, window_bounds = array<i64: 32, 32>}, {pipeline_mode = #tpu.pipeline_mode<synchronous>, transform_indices = @transform_6, window_bounds = array<i64: 32, 32>}, {pipeline_mode = #tpu.pipeline_mode<synchronous>, transform_indices = @transform_7, window_bounds = array<i64: 32, 32>}, {pipeline_mode = #tpu.pipeline_mode<synchronous>, transform_indices = @transform_8, window_bounds = array<i64: 1, 32>}, {pipeline_mode = #tpu.pipeline_mode<synchronous>, transform_indices = @transform_9, window_bounds = array<i64: 1, 32>}, {transform_indices = @transform_10, window_bounds = array<i64: 2, 8, 32>}, {transform_indices = @transform_11, window_bounds = array<i64: 2, 4, 8, 8>}]} {
    %c0 = arith.constant 0 : index
    %c0_0 = arith.constant 0 : index
    %c0_1 = arith.constant 0 : index
    %0 = vector.load %arg1[%c0, %c0_0, %c0_1] : memref<2x8x32xf32, #tpu.memory_space<vmem>>, vector<2x8x32xf32>
    %1 = vector.shape_cast %0 : vector<2x8x32xf32> to vector<16x32xf32>
    %c0_2 = arith.constant 0 : index
    %c0_3 = arith.constant 0 : index
    %c0_4 = arith.constant 0 : index
    %2 = vector.load %arg2[%c0_2, %c0_3, %c0_4] : memref<2x8x32xf32, #tpu.memory_space<vmem>>, vector<2x8x32xf32>
    %3 = vector.shape_cast %2 : vector<2x8x32xf32> to vector<16x32xf32>
    %c0_5 = arith.constant 0 : index
    %c0_6 = arith.constant 0 : index
    %c0_7 = arith.constant 0 : index
    %4 = vector.load %arg3[%c0_5, %c0_6, %c0_7] : memref<2x8x32xf32, #tpu.memory_space<vmem>>, vector<2x8x32xf32>
    %5 = vector.shape_cast %4 : vector<2x8x32xf32> to vector<16x32xf32>
    %c0_8 = arith.constant 0 : index
    %c0_9 = arith.constant 0 : index
    %6 = vector.load %arg5[%c0_8, %c0_9] : memref<32x32xf32, #tpu.memory_space<vmem>>, vector<32x32xf32>
    %cst = arith.constant dense<0.000000e+00> : vector<16x32xf32>
    %7 = tpu.matmul %1, %6, %cst {dimension_numbers = #tpu.dot_dimension_numbers<[1], [0], [0], [1], [0, 0, 1, 1], [], []>} : vector<16x32xf32>, vector<32x32xf32>, vector<16x32xf32> -> vector<16x32xf32>
    %c0_10 = arith.constant 0 : index
    %c0_11 = arith.constant 0 : index
    %8 = vector.load %arg6[%c0_10, %c0_11] : memref<32x32xf32, #tpu.memory_space<vmem>>, vector<32x32xf32>
    %cst_12 = arith.constant dense<0.000000e+00> : vector<16x32xf32>
    %9 = tpu.matmul %3, %8, %cst_12 {dimension_numbers = #tpu.dot_dimension_numbers<[1], [0], [0], [1], [0, 0, 1, 1], [], []>} : vector<16x32xf32>, vector<32x32xf32>, vector<16x32xf32> -> vector<16x32xf32>
    %c0_13 = arith.constant 0 : index
    %c0_14 = arith.constant 0 : index
    %10 = vector.load %arg7[%c0_13, %c0_14] : memref<32x32xf32, #tpu.memory_space<vmem>>, vector<32x32xf32>
    %cst_15 = arith.constant dense<0.000000e+00> : vector<16x32xf32>
    %11 = tpu.matmul %5, %10, %cst_15 {dimension_numbers = #tpu.dot_dimension_numbers<[1], [0], [0], [1], [0, 0, 1, 1], [], []>} : vector<16x32xf32>, vector<32x32xf32>, vector<16x32xf32> -> vector<16x32xf32>
    %cst_16 = arith.constant 0.353553385 : f32
    %12 = vector.broadcast %cst_16 : f32 to vector<16x32xf32>
    %13 = arith.mulf %7, %12 : vector<16x32xf32>
    %14 = vector.shape_cast %13 : vector<16x32xf32> to vector<2x8x32xf32>
    %15 = vector.shape_cast %9 : vector<16x32xf32> to vector<2x8x32xf32>
    %16 = vector.shape_cast %11 : vector<16x32xf32> to vector<2x8x32xf32>
    %c0_17 = arith.constant 0 : index
    %c0_18 = arith.constant 0 : index
    %c0_19 = arith.constant 0 : index
    %17 = vector.load %arg4[%c0_17, %c0_18, %c0_19] : memref<2x8x8xf32, #tpu.memory_space<vmem>>, vector<2x8x8xf32>
    %cst_20 = arith.constant 0.000000e+00 : f32
    %18 = vector.broadcast %cst_20 : f32 to vector<16x32xf32>
    %19 = vector.extract_strided_slice %14 {offsets = [0, 0, 0], sizes = [2, 8, 8], strides = [1, 1, 1]} : vector<2x8x32xf32> to vector<2x8x8xf32>
    %20 = vector.extract_strided_slice %15 {offsets = [0, 0, 0], sizes = [2, 8, 8], strides = [1, 1, 1]} : vector<2x8x32xf32> to vector<2x8x8xf32>
    %21 = vector.extract_strided_slice %16 {offsets = [0, 0, 0], sizes = [2, 8, 8], strides = [1, 1, 1]} : vector<2x8x32xf32> to vector<2x8x8xf32>
    %cst_21 = arith.constant dense<0.000000e+00> : vector<2x8x8xf32>
    %22 = tpu.matmul %19, %20, %cst_21 {dimension_numbers = #tpu.dot_dimension_numbers<[2], [2], [1], [1], [0, 0, 0, 1, 1, 1], [0], [0]>} : vector<2x8x8xf32>, vector<2x8x8xf32>, vector<2x8x8xf32> -> vector<2x8x8xf32>
    %23 = arith.addf %22, %17 : vector<2x8x8xf32>
    %cst_22 = arith.constant dense<0xFF800000> : vector<2x8xf32>
    %24 = vector.multi_reduction <maximumf>, %23, %cst_22 [2] : vector<2x8x8xf32> to vector<2x8xf32>
    %25 = vector.shape_cast %24 : vector<2x8xf32> to vector<2x8x1xf32>
    %26 = vector.broadcast %25 : vector<2x8x1xf32> to vector<2x8x8xf32>
    %27 = arith.subf %23, %26 : vector<2x8x8xf32>
    %28 = math.exp %27 : vector<2x8x8xf32>
    %cst_23 = arith.constant dense<0.000000e+00> : vector<2x8xf32>
    %29 = vector.multi_reduction <add>, %28, %cst_23 [2] : vector<2x8x8xf32> to vector<2x8xf32>
    %30 = vector.shape_cast %29 : vector<2x8xf32> to vector<2x8x1xf32>
    %31 = tpu.reciprocal %30 : vector<2x8x1xf32> -> vector<2x8x1xf32>
    %32 = vector.broadcast %31 : vector<2x8x1xf32> to vector<2x8x8xf32>
    %33 = arith.mulf %28, %32 : vector<2x8x8xf32>
    %c0_24 = arith.constant 0 : index
    %c0_25 = arith.constant 0 : index
    %c0_26 = arith.constant 0 : index
    %c0_27 = arith.constant 0 : index
    %34 = vector.load %arg12[%c0_24, %c0_25, %c0_26, %c0_27] : memref<2x4x8x8xf32, #tpu.memory_space<vmem>>, vector<2x1x8x8xf32>
    %35 = vector.shape_cast %34 : vector<2x1x8x8xf32> to vector<2x8x8xf32>
    %36 = vector.shape_cast %33 : vector<2x8x8xf32> to vector<2x1x8x8xf32>
    tpu.vector_store %arg12[%c0_24, %c0_25, %c0_26, %c0_27], %36 {strides = array<i32>} : memref<2x4x8x8xf32, #tpu.memory_space<vmem>>, vector<2x1x8x8xf32>,
    %cst_28 = arith.constant dense<0.000000e+00> : vector<2x8x8xf32>
    %37 = tpu.matmul %33, %21, %cst_28 {dimension_numbers = #tpu.dot_dimension_numbers<[2], [1], [1], [2], [0, 0, 0, 1, 1, 2], [0], [0]>} : vector<2x8x8xf32>, vector<2x8x8xf32>, vector<2x8x8xf32> -> vector<2x8x8xf32>
    %38 = vector.shape_cast %37 : vector<2x8x8xf32> to vector<16x8xf32>
    %c0_29 = arith.constant 0 : index
    %c0_30 = arith.constant 0 : index
    %39 = vector.load %arg8[%c0_29, %c0_30] : memref<32x32xf32, #tpu.memory_space<vmem>>, vector<8x32xf32>
    %cst_31 = arith.constant dense<0.000000e+00> : vector<16x32xf32>
    %40 = tpu.matmul %38, %39, %cst_31 {dimension_numbers = #tpu.dot_dimension_numbers<[1], [0], [0], [1], [0, 0, 1, 1], [], []>} : vector<16x8xf32>, vector<8x32xf32>, vector<16x32xf32> -> vector<16x32xf32>
    %41 = arith.addf %18, %40 : vector<16x32xf32>
    %42 = vector.extract_strided_slice %14 {offsets = [0, 0, 8], sizes = [2, 8, 8], strides = [1, 1, 1]} : vector<2x8x32xf32> to vector<2x8x8xf32>
    %43 = vector.extract_strided_slice %15 {offsets = [0, 0, 8], sizes = [2, 8, 8], strides = [1, 1, 1]} : vector<2x8x32xf32> to vector<2x8x8xf32>
    %44 = vector.extract_strided_slice %16 {offsets = [0, 0, 8], sizes = [2, 8, 8], strides = [1, 1, 1]} : vector<2x8x32xf32> to vector<2x8x8xf32>
    %cst_32 = arith.constant dense<0.000000e+00> : vector<2x8x8xf32>
    %45 = tpu.matmul %42, %43, %cst_32 {dimension_numbers = #tpu.dot_dimension_numbers<[2], [2], [1], [1], [0, 0, 0, 1, 1, 1], [0], [0]>} : vector<2x8x8xf32>, vector<2x8x8xf32>, vector<2x8x8xf32> -> vector<2x8x8xf32>
    %46 = arith.addf %45, %17 : vector<2x8x8xf32>
    %cst_33 = arith.constant dense<0xFF800000> : vector<2x8xf32>
    %47 = vector.multi_reduction <maximumf>, %46, %cst_33 [2] : vector<2x8x8xf32> to vector<2x8xf32>
    %48 = vector.shape_cast %47 : vector<2x8xf32> to vector<2x8x1xf32>
    %49 = vector.broadcast %48 : vector<2x8x1xf32> to vector<2x8x8xf32>
    %50 = arith.subf %46, %49 : vector<2x8x8xf32>
    %51 = math.exp %50 : vector<2x8x8xf32>
    %cst_34 = arith.constant dense<0.000000e+00> : vector<2x8xf32>
    %52 = vector.multi_reduction <add>, %51, %cst_34 [2] : vector<2x8x8xf32> to vector<2x8xf32>
    %53 = vector.shape_cast %52 : vector<2x8xf32> to vector<2x8x1xf32>
    %54 = tpu.reciprocal %53 : vector<2x8x1xf32> -> vector<2x8x1xf32>
    %55 = vector.broadcast %54 : vector<2x8x1xf32> to vector<2x8x8xf32>
    %56 = arith.mulf %51, %55 : vector<2x8x8xf32>
    %c0_35 = arith.constant 0 : index
    %c1 = arith.constant 1 : index
    %c0_36 = arith.constant 0 : index
    %c0_37 = arith.constant 0 : index
    %57 = vector.load %arg12[%c0_35, %c1, %c0_36, %c0_37] : memref<2x4x8x8xf32, #tpu.memory_space<vmem>>, vector<2x1x8x8xf32>
    %58 = vector.shape_cast %57 : vector<2x1x8x8xf32> to vector<2x8x8xf32>
    %59 = vector.shape_cast %56 : vector<2x8x8xf32> to vector<2x1x8x8xf32>
    tpu.vector_store %arg12[%c0_35, %c1, %c0_36, %c0_37], %59 {strides = array<i32>} : memref<2x4x8x8xf32, #tpu.memory_space<vmem>>, vector<2x1x8x8xf32>,
    %cst_38 = arith.constant dense<0.000000e+00> : vector<2x8x8xf32>
    %60 = tpu.matmul %56, %44, %cst_38 {dimension_numbers = #tpu.dot_dimension_numbers<[2], [1], [1], [2], [0, 0, 0, 1, 1, 2], [0], [0]>} : vector<2x8x8xf32>, vector<2x8x8xf32>, vector<2x8x8xf32> -> vector<2x8x8xf32>
    %61 = vector.shape_cast %60 : vector<2x8x8xf32> to vector<16x8xf32>
    %c8 = arith.constant 8 : index
    %c0_39 = arith.constant 0 : index
    %62 = vector.load %arg8[%c8, %c0_39] : memref<32x32xf32, #tpu.memory_space<vmem>>, vector<8x32xf32>
    %cst_40 = arith.constant dense<0.000000e+00> : vector<16x32xf32>
    %63 = tpu.matmul %61, %62, %cst_40 {dimension_numbers = #tpu.dot_dimension_numbers<[1], [0], [0], [1], [0, 0, 1, 1], [], []>} : vector<16x8xf32>, vector<8x32xf32>, vector<16x32xf32> -> vector<16x32xf32>
    %64 = arith.addf %41, %63 : vector<16x32xf32>
    %65 = vector.extract_strided_slice %14 {offsets = [0, 0, 16], sizes = [2, 8, 8], strides = [1, 1, 1]} : vector<2x8x32xf32> to vector<2x8x8xf32>
    %66 = vector.extract_strided_slice %15 {offsets = [0, 0, 16], sizes = [2, 8, 8], strides = [1, 1, 1]} : vector<2x8x32xf32> to vector<2x8x8xf32>
    %67 = vector.extract_strided_slice %16 {offsets = [0, 0, 16], sizes = [2, 8, 8], strides = [1, 1, 1]} : vector<2x8x32xf32> to vector<2x8x8xf32>
    %cst_41 = arith.constant dense<0.000000e+00> : vector<2x8x8xf32>
    %68 = tpu.matmul %65, %66, %cst_41 {dimension_numbers = #tpu.dot_dimension_numbers<[2], [2], [1], [1], [0, 0, 0, 1, 1, 1], [0], [0]>} : vector<2x8x8xf32>, vector<2x8x8xf32>, vector<2x8x8xf32> -> vector<2x8x8xf32>
    %69 = arith.addf %68, %17 : vector<2x8x8xf32>
    %cst_42 = arith.constant dense<0xFF800000> : vector<2x8xf32>
    %70 = vector.multi_reduction <maximumf>, %69, %cst_42 [2] : vector<2x8x8xf32> to vector<2x8xf32>
    %71 = vector.shape_cast %70 : vector<2x8xf32> to vector<2x8x1xf32>
    %72 = vector.broadcast %71 : vector<2x8x1xf32> to vector<2x8x8xf32>
    %73 = arith.subf %69, %72 : vector<2x8x8xf32>
    %74 = math.exp %73 : vector<2x8x8xf32>
    %cst_43 = arith.constant dense<0.000000e+00> : vector<2x8xf32>
    %75 = vector.multi_reduction <add>, %74, %cst_43 [2] : vector<2x8x8xf32> to vector<2x8xf32>
    %76 = vector.shape_cast %75 : vector<2x8xf32> to vector<2x8x1xf32>
    %77 = tpu.reciprocal %76 : vector<2x8x1xf32> -> vector<2x8x1xf32>
    %78 = vector.broadcast %77 : vector<2x8x1xf32> to vector<2x8x8xf32>
    %79 = arith.mulf %74, %78 : vector<2x8x8xf32>
    %c0_44 = arith.constant 0 : index
    %c2 = arith.constant 2 : index
    %c0_45 = arith.constant 0 : index
    %c0_46 = arith.constant 0 : index
    %80 = vector.load %arg12[%c0_44, %c2, %c0_45, %c0_46] : memref<2x4x8x8xf32, #tpu.memory_space<vmem>>, vector<2x1x8x8xf32>
    %81 = vector.shape_cast %80 : vector<2x1x8x8xf32> to vector<2x8x8xf32>
    %82 = vector.shape_cast %79 : vector<2x8x8xf32> to vector<2x1x8x8xf32>
    tpu.vector_store %arg12[%c0_44, %c2, %c0_45, %c0_46], %82 {strides = array<i32>} : memref<2x4x8x8xf32, #tpu.memory_space<vmem>>, vector<2x1x8x8xf32>,
    %cst_47 = arith.constant dense<0.000000e+00> : vector<2x8x8xf32>
    %83 = tpu.matmul %79, %67, %cst_47 {dimension_numbers = #tpu.dot_dimension_numbers<[2], [1], [1], [2], [0, 0, 0, 1, 1, 2], [0], [0]>} : vector<2x8x8xf32>, vector<2x8x8xf32>, vector<2x8x8xf32> -> vector<2x8x8xf32>
    %84 = vector.shape_cast %83 : vector<2x8x8xf32> to vector<16x8xf32>
    %c16 = arith.constant 16 : index
    %c0_48 = arith.constant 0 : index
    %85 = vector.load %arg8[%c16, %c0_48] : memref<32x32xf32, #tpu.memory_space<vmem>>, vector<8x32xf32>
    %cst_49 = arith.constant dense<0.000000e+00> : vector<16x32xf32>
    %86 = tpu.matmul %84, %85, %cst_49 {dimension_numbers = #tpu.dot_dimension_numbers<[1], [0], [0], [1], [0, 0, 1, 1], [], []>} : vector<16x8xf32>, vector<8x32xf32>, vector<16x32xf32> -> vector<16x32xf32>
    %87 = arith.addf %64, %86 : vector<16x32xf32>
    %88 = vector.extract_strided_slice %14 {offsets = [0, 0, 24], sizes = [2, 8, 8], strides = [1, 1, 1]} : vector<2x8x32xf32> to vector<2x8x8xf32>
    %89 = vector.extract_strided_slice %15 {offsets = [0, 0, 24], sizes = [2, 8, 8], strides = [1, 1, 1]} : vector<2x8x32xf32> to vector<2x8x8xf32>
    %90 = vector.extract_strided_slice %16 {offsets = [0, 0, 24], sizes = [2, 8, 8], strides = [1, 1, 1]} : vector<2x8x32xf32> to vector<2x8x8xf32>
    %cst_50 = arith.constant dense<0.000000e+00> : vector<2x8x8xf32>
    %91 = tpu.matmul %88, %89, %cst_50 {dimension_numbers = #tpu.dot_dimension_numbers<[2], [2], [1], [1], [0, 0, 0, 1, 1, 1], [0], [0]>} : vector<2x8x8xf32>, vector<2x8x8xf32>, vector<2x8x8xf32> -> vector<2x8x8xf32>
    %92 = arith.addf %91, %17 : vector<2x8x8xf32>
    %cst_51 = arith.constant dense<0xFF800000> : vector<2x8xf32>
    %93 = vector.multi_reduction <maximumf>, %92, %cst_51 [2] : vector<2x8x8xf32> to vector<2x8xf32>
    %94 = vector.shape_cast %93 : vector<2x8xf32> to vector<2x8x1xf32>
    %95 = vector.broadcast %94 : vector<2x8x1xf32> to vector<2x8x8xf32>
    %96 = arith.subf %92, %95 : vector<2x8x8xf32>
    %97 = math.exp %96 : vector<2x8x8xf32>
    %cst_52 = arith.constant dense<0.000000e+00> : vector<2x8xf32>
    %98 = vector.multi_reduction <add>, %97, %cst_52 [2] : vector<2x8x8xf32> to vector<2x8xf32>
    %99 = vector.shape_cast %98 : vector<2x8xf32> to vector<2x8x1xf32>
    %100 = tpu.reciprocal %99 : vector<2x8x1xf32> -> vector<2x8x1xf32>
    %101 = vector.broadcast %100 : vector<2x8x1xf32> to vector<2x8x8xf32>
    %102 = arith.mulf %97, %101 : vector<2x8x8xf32>
    %c0_53 = arith.constant 0 : index
    %c3 = arith.constant 3 : index
    %c0_54 = arith.constant 0 : index
    %c0_55 = arith.constant 0 : index
    %103 = vector.load %arg12[%c0_53, %c3, %c0_54, %c0_55] : memref<2x4x8x8xf32, #tpu.memory_space<vmem>>, vector<2x1x8x8xf32>
    %104 = vector.shape_cast %103 : vector<2x1x8x8xf32> to vector<2x8x8xf32>
    %105 = vector.shape_cast %102 : vector<2x8x8xf32> to vector<2x1x8x8xf32>
    tpu.vector_store %arg12[%c0_53, %c3, %c0_54, %c0_55], %105 {strides = array<i32>} : memref<2x4x8x8xf32, #tpu.memory_space<vmem>>, vector<2x1x8x8xf32>,
    %cst_56 = arith.constant dense<0.000000e+00> : vector<2x8x8xf32>
    %106 = tpu.matmul %102, %90, %cst_56 {dimension_numbers = #tpu.dot_dimension_numbers<[2], [1], [1], [2], [0, 0, 0, 1, 1, 2], [0], [0]>} : vector<2x8x8xf32>, vector<2x8x8xf32>, vector<2x8x8xf32> -> vector<2x8x8xf32>
    %107 = vector.shape_cast %106 : vector<2x8x8xf32> to vector<16x8xf32>
    %c24 = arith.constant 24 : index
    %c0_57 = arith.constant 0 : index
    %108 = vector.load %arg8[%c24, %c0_57] : memref<32x32xf32, #tpu.memory_space<vmem>>, vector<8x32xf32>
    %cst_58 = arith.constant dense<0.000000e+00> : vector<16x32xf32>
    %109 = tpu.matmul %107, %108, %cst_58 {dimension_numbers = #tpu.dot_dimension_numbers<[1], [0], [0], [1], [0, 0, 1, 1], [], []>} : vector<16x8xf32>, vector<8x32xf32>, vector<16x32xf32> -> vector<16x32xf32>
    %110 = arith.addf %87, %109 : vector<16x32xf32>
    %111 = arith.addf %110, %1 : vector<16x32xf32>
    %cst_59 = arith.constant dense<0.000000e+00> : vector<16xf32>
    %112 = vector.multi_reduction <add>, %111, %cst_59 [1] : vector<16x32xf32> to vector<16xf32>
    %113 = vector.shape_cast %112 : vector<16xf32> to vector<16x1xf32>
    %cst_60 = arith.constant 3.200000e+01 : f32
    %114 = vector.broadcast %cst_60 : f32 to vector<16x1xf32>
    %115 = arith.divf %113, %114 : vector<16x1xf32>
    %116 = vector.broadcast %115 : vector<16x1xf32> to vector<16x32xf32>
    %117 = arith.subf %111, %116 : vector<16x32xf32>
    %118 = arith.mulf %117, %117 : vector<16x32xf32>
    %cst_61 = arith.constant dense<0.000000e+00> : vector<16xf32>
    %119 = vector.multi_reduction <add>, %118, %cst_61 [1] : vector<16x32xf32> to vector<16xf32>
    %120 = vector.shape_cast %119 : vector<16xf32> to vector<16x1xf32>
    %cst_62 = arith.constant 3.200000e+01 : f32
    %121 = vector.broadcast %cst_62 : f32 to vector<16x1xf32>
    %122 = arith.divf %120, %121 : vector<16x1xf32>
    %cst_63 = arith.constant 9.99999974E-6 : f32
    %123 = vector.broadcast %cst_63 : f32 to vector<16x1xf32>
    %124 = arith.addf %122, %123 : vector<16x1xf32>
    %125 = math.rsqrt %124 : vector<16x1xf32>
    %126 = vector.broadcast %125 : vector<16x1xf32> to vector<16x32xf32>
    %127 = arith.mulf %117, %126 : vector<16x32xf32>
    %c0_64 = arith.constant 0 : index
    %c0_65 = arith.constant 0 : index
    %128 = vector.load %arg9[%c0_64, %c0_65] : memref<1x32xf32, #tpu.memory_space<vmem>>, vector<1x32xf32>
    %129 = vector.broadcast %128 : vector<1x32xf32> to vector<16x32xf32>
    %130 = arith.mulf %127, %129 : vector<16x32xf32>
    %c0_66 = arith.constant 0 : index
    %c0_67 = arith.constant 0 : index
    %131 = vector.load %arg10[%c0_66, %c0_67] : memref<1x32xf32, #tpu.memory_space<vmem>>, vector<1x32xf32>
    %132 = vector.broadcast %131 : vector<1x32xf32> to vector<16x32xf32>
    %133 = arith.addf %130, %132 : vector<16x32xf32>
    %134 = vector.shape_cast %133 : vector<16x32xf32> to vector<2x8x32xf32>
    %c0_68 = arith.constant 0 : index
    %c0_69 = arith.constant 0 : index
    %c0_70 = arith.constant 0 : index
    %135 = vector.load %arg11[%c0_68, %c0_69, %c0_70] : memref<2x8x32xf32, #tpu.memory_space<vmem>>, vector<2x8x32xf32>
    tpu.vector_store %arg11[%c0_68, %c0_69, %c0_70], %134 {strides = array<i32>} : memref<2x8x32xf32, #tpu.memory_space<vmem>>, vector<2x8x32xf32>,
    return
  }
  func.func @transform_0(%arg0: i32) -> (i32, i32, i32) {
    %c0_i32 = arith.constant 0 : i32
    %c0_i32_0 = arith.constant 0 : i32
    %c0_i32_1 = arith.constant 0 : i32
    return %arg0, %c0_i32, %c0_i32_0 : i32, i32, i32
  }
  func.func @transform_1(%arg0: i32) -> (i32, i32, i32) {
    %c0_i32 = arith.constant 0 : i32
    %c0_i32_0 = arith.constant 0 : i32
    %c0_i32_1 = arith.constant 0 : i32
    return %arg0, %c0_i32, %c0_i32_0 : i32, i32, i32
  }
  func.func @transform_2(%arg0: i32) -> (i32, i32, i32) {
    %c0_i32 = arith.constant 0 : i32
    %c0_i32_0 = arith.constant 0 : i32
    %c0_i32_1 = arith.constant 0 : i32
    return %arg0, %c0_i32, %c0_i32_0 : i32, i32, i32
  }
  func.func @transform_3(%arg0: i32) -> (i32, i32, i32) {
    %c0_i32 = arith.constant 0 : i32
    %c0_i32_0 = arith.constant 0 : i32
    %c0_i32_1 = arith.constant 0 : i32
    return %arg0, %c0_i32, %c0_i32_0 : i32, i32, i32
  }
  func.func @transform_4(%arg0: i32) -> (i32, i32) {
    %c0_i32 = arith.constant 0 : i32
    %c0_i32_0 = arith.constant 0 : i32
    %c0_i32_1 = arith.constant 0 : i32
    return %c0_i32, %c0_i32_0 : i32, i32
  }
  func.func @transform_5(%arg0: i32) -> (i32, i32) {
    %c0_i32 = arith.constant 0 : i32
    %c0_i32_0 = arith.constant 0 : i32
    %c0_i32_1 = arith.constant 0 : i32
    return %c0_i32, %c0_i32_0 : i32, i32
  }
  func.func @transform_6(%arg0: i32) -> (i32, i32) {
    %c0_i32 = arith.constant 0 : i32
    %c0_i32_0 = arith.constant 0 : i32
    %c0_i32_1 = arith.constant 0 : i32
    return %c0_i32, %c0_i32_0 : i32, i32
  }
  func.func @transform_7(%arg0: i32) -> (i32, i32) {
    %c0_i32 = arith.constant 0 : i32
    %c0_i32_0 = arith.constant 0 : i32
    %c0_i32_1 = arith.constant 0 : i32
    return %c0_i32, %c0_i32_0 : i32, i32
  }
  func.func @transform_8(%arg0: i32) -> (i32, i32) {
    %c0_i32 = arith.constant 0 : i32
    %c0_i32_0 = arith.constant 0 : i32
    %c0_i32_1 = arith.constant 0 : i32
    return %c0_i32, %c0_i32_0 : i32, i32
  }
  func.func @transform_9(%arg0: i32) -> (i32, i32) {
    %c0_i32 = arith.constant 0 : i32
    %c0_i32_0 = arith.constant 0 : i32
    %c0_i32_1 = arith.constant 0 : i32
    return %c0_i32, %c0_i32_0 : i32, i32
  }
  func.func @transform_10(%arg0: i32) -> (i32, i32, i32) {
    %c0_i32 = arith.constant 0 : i32
    %c0_i32_0 = arith.constant 0 : i32
    %c0_i32_1 = arith.constant 0 : i32
    return %arg0, %c0_i32, %c0_i32_0 : i32, i32, i32
  }
  func.func @transform_11(%arg0: i32) -> (i32, i32, i32, i32) {
    %c0_i32 = arith.constant 0 : i32
    %c0_i32_0 = arith.constant 0 : i32
    %c0_i32_1 = arith.constant 0 : i32
    %c0_i32_2 = arith.constant 0 : i32
    return %arg0, %c0_i32, %c0_i32_0, %c0_i32_1 : i32, i32, i32, i32
  }
}

</mosaic_0001>

<bundles_post_ra>
// kernel: tpu_custom_call.1
= control target key start
LH: loop header
LB: loop body
LE: loop exit
PB: predicated region body
PF: predicated region fallthrough
CT: control target
= control target key end

     0   :  { %17 = vsyncpa [#allocation3], 0  ;;  %s3165_s0 = inlined_call_operand.hbm [shape: f32[2,8,32], index: 0, kind: input, shape index: {}]   ;;  %s3166_s1 = inlined_call_operand.hbm [shape: f32[2,8,32], index: 1, kind: input, shape index: {}]   ;;  %s3167_s2 = inlined_call_operand.hbm [shape: f32[2,8,32], index: 2, kind: input, shape index: {}]   ;;  %s3168_s3 = inlined_call_operand.hbm [shape: f32[2,8,8], index: 3, kind: input, shape index: {}]   ;;  %s3169_s4 = inlined_call_operand.hbm [shape: f32[32,32], index: 4, kind: input, shape index: {}]   ;;  %s3170_s5 = inlined_call_operand.hbm [shape: f32[32,32], index: 5, kind: input, shape index: {}]   ;;  %s3171_s6 = inlined_call_operand.hbm [shape: f32[32,32], index: 6, kind: input, shape index: {}]   ;;  %s3172_s7 = inlined_call_operand.hbm [shape: f32[32,32], index: 7, kind: input, shape index: {}]   ;;  %s3173_s8 = inlined_call_operand.vmem [shape: f32[1,32], index: 8, kind: input, shape index: {}]   ;;  %s3174_s9 = inlined_call_operand.vmem [shape: f32[1,32], index: 9, kind: input, shape index: {}]   ;;  %s3175_s10 = inlined_call_operand.hbm [shape: f32[2,8,32], index: 10, kind: output, shape index: {0}]   ;;  %s3176_s11 = inlined_call_operand.hbm [shape: f32[2,4,8,8], index: 11, kind: output, shape index: {1}]  }
   0x1   :  { %18 = vsyncpa [#allocation6], 0 }
   0x2   :  { %19 = vsyncpa [#allocation9], 0 }
   0x3   :  { %20 = vsyncpa [#allocation12], 0 }
   0x4   :  { %21 = vsyncpa [#allocation15], 0 }
   0x5   :  { %22 = vsyncpa [#allocation4], 0 }
   0x6   :  { %23 = vsyncpa [#allocation18], 0  ;;  %s2708_s17 = smov [#allocation5]   ;;  %s2709_s19 = smov [#allocation8]  }
   0x7   :  { %s41_s18 = sshll.u32 %s2708_s17, 4  ;;  %s65_s20 = sshll.u32 %s2709_s19, 4  ;;  %s42_s18 = int_to_ptr.vmem [resolvable:$true] %s41_s18  ;;  %s2785_s20 = int_to_ptr.vmem [resolvable:$true] %s65_s20 }
   0x8   :  { %s2474_s23 = scalar_lea.hbm %s3166_s1, 256 }
   0x9   :  { %p2475_p0 = scmp.ne.s32.totalorder %s3166_s1, %s2474_s23  ;;  %p2478_p1 = scmp.lt.u32.totalorder %s2474_s23, %s3166_s1 }
   0xb   :  { %p2480_p2 = pnand %p2478_p1, %p2475_p0 }
   0xd   :  { %2483 = shalt.err (!%p2480_p2)
}
   0xe   :  { %s2484_s28 = scalar_lea.vmem %s42_s18, 256  ;;  %p2489_p4 = scmp.lt.s32.totalorder %s42_s18, %s42_s18 }
   0xf   :  { %p2485_p3 = scmp.ne.s32.totalorder %s42_s18, %s2484_s28  ;;  %p2490_p5 = scmp.lt.s32.totalorder %s2484_s28, %s2484_s28 }
  0x11   :  { %p2491_p6 = por %p2490_p5, %p2489_p4 }
  0x13   :  { %p2492_p7 = pnand %p2491_p6, %p2485_p3 }
  0x15   :  { %2495 = shalt.err (!%p2492_p7)
}
  0x16   :  { %s2710_s29 = smov 128   ;;  %s2711_s30 = smov 8  }
  0x17   :  { %47 = dma.hbm_to_vmem [thread:$0]  %s3166_s1, 256, %s42_s18, [#allocation6], %s2710_s29, %s2710_s29, %s2711_s30  }
  0x18   :  { %s2496_s16 = scalar_lea.hbm %s3168_s3, 256 }
  0x19   :  { %p2497_p8 = scmp.ne.s32.totalorder %s3168_s3, %s2496_s16  ;;  %p2500_p9 = scmp.lt.u32.totalorder %s2496_s16, %s3168_s3 }
  0x1b   :  { %p2502_p10 = pnand %p2500_p9, %p2497_p8 }
  0x1d   :  { %2505 = shalt.err (!%p2502_p10)
}
  0x1e   :  { %s2506_s23 = scalar_lea.vmem %s2785_s20, 256  ;;  %p2511_p12 = scmp.lt.s32.totalorder %s2785_s20, %s2785_s20 }
  0x1f   :  { %p2507_p11 = scmp.ne.s32.totalorder %s2785_s20, %s2506_s23  ;;  %p2512_p13 = scmp.lt.s32.totalorder %s2506_s23, %s2506_s23 }
  0x21   :  { %p2513_p0 = por %p2512_p13, %p2511_p12 }
  0x23   :  { %p2514_p1 = pnand %p2513_p0, %p2507_p11 }
  0x25   :  { %2517 = shalt.err (!%p2514_p1)
}
  0x26   :  { %71 = dma.hbm_to_vmem [thread:$0]  %s3168_s3, 256, %s2785_s20, [#allocation9], %s2710_s29, %s2710_s29, %s2711_s30  }
  0x27   :  { %s2712_s24 = smov [#allocation11]   ;;  %s2713_s26 = smov [#allocation2]  }
  0x28   :  { %s89_s25 = sshll.u32 %s2712_s24, 4  ;;  %s29_s27 = sshll.u32 %s2713_s26, 4  ;;  %s90_s25 = int_to_ptr.vmem [resolvable:$true] %s89_s25  ;;  %s2822_s27 = int_to_ptr.vmem [resolvable:$true] %s29_s27 }
  0x29   :  { %s2518_s13 = scalar_lea.hbm %s3170_s5, 512 }
  0x2a   :  { %p2519_p2 = scmp.ne.s32.totalorder %s3170_s5, %s2518_s13  ;;  %p2522_p3 = scmp.lt.u32.totalorder %s2518_s13, %s3170_s5 }
  0x2c   :  { %p2524_p4 = pnand %p2522_p3, %p2519_p2 }
  0x2e   :  { %2527 = shalt.err (!%p2524_p4)
}
  0x2f   :  { %s2528_s3 = scalar_lea.vmem %s90_s25, 512  ;;  %p2533_p6 = scmp.lt.s32.totalorder %s90_s25, %s90_s25 }
  0x30   :  { %p2529_p5 = scmp.ne.s32.totalorder %s90_s25, %s2528_s3  ;;  %p2534_p7 = scmp.lt.s32.totalorder %s2528_s3, %s2528_s3 }
  0x32   :  { %p2535_p8 = por %p2534_p7, %p2533_p6 }
  0x34   :  { %p2536_p9 = pnand %p2535_p8, %p2529_p5 }
  0x36   :  { %2539 = shalt.err (!%p2536_p9)
}
  0x37   :  { %95 = dma.hbm_to_vmem [thread:$0]  %s3170_s5, 512, %s90_s25, [#allocation12], %s2710_s29, %s2710_s29, %s2711_s30  }
  0x38   :  { %s2540_s23 = scalar_lea.hbm %s3165_s0, 256 }
  0x39   :  { %p2541_p10 = scmp.ne.s32.totalorder %s3165_s0, %s2540_s23  ;;  %p2544_p11 = scmp.lt.u32.totalorder %s2540_s23, %s3165_s0 }
  0x3b   :  { %p2546_p12 = pnand %p2544_p11, %p2541_p10 }
  0x3d   :  { %2549 = shalt.err (!%p2546_p12)
}
  0x3e   :  { %s2550_s28 = scalar_lea.vmem %s2822_s27, 256  ;;  %p2555_p0 = scmp.lt.s32.totalorder %s2822_s27, %s2822_s27 }
  0x3f   :  { %p2551_p13 = scmp.ne.s32.totalorder %s2822_s27, %s2550_s28  ;;  %p2556_p1 = scmp.lt.s32.totalorder %s2550_s28, %s2550_s28 }
  0x41   :  { %p2557_p2 = por %p2556_p1, %p2555_p0 }
  0x43   :  { %p2558_p3 = pnand %p2557_p2, %p2551_p13 }
  0x45   :  { %2561 = shalt.err (!%p2558_p3)
}
  0x46   :  { %35 = dma.hbm_to_vmem [thread:$0]  %s3165_s0, 256, %s2822_s27, [#allocation3], %s2710_s29, %s2710_s29, %s2711_s30  }
  0x47   :  { %s2714_s12 = smov [#allocation7]   ;;  %s2715_s14 = smov [#allocation10]  }
  0x48   :  { %s53_s13 = sshll.u32 %s2714_s12, 4  ;;  %s77_s15 = sshll.u32 %s2715_s14, 4  ;;  %s54_s13 = int_to_ptr.vmem [resolvable:$true] %s53_s13  ;;  %s2859_s15 = int_to_ptr.vmem [resolvable:$true] %s77_s15 }
  0x49   :  { %s2562_s3 = scalar_lea.hbm %s3167_s2, 256 }
  0x4a   :  { %p2563_p4 = scmp.ne.s32.totalorder %s3167_s2, %s2562_s3  ;;  %p2566_p5 = scmp.lt.u32.totalorder %s2562_s3, %s3167_s2 }
  0x4c   :  { %p2568_p6 = pnand %p2566_p5, %p2563_p4 }
  0x4e   :  { %2571 = shalt.err (!%p2568_p6)
}
  0x4f   :  { %s2572_s0 = scalar_lea.vmem %s54_s13, 256  ;;  %p2577_p8 = scmp.lt.s32.totalorder %s54_s13, %s54_s13 }
  0x50   :  { %p2573_p7 = scmp.ne.s32.totalorder %s54_s13, %s2572_s0  ;;  %p2578_p9 = scmp.lt.s32.totalorder %s2572_s0, %s2572_s0 }
  0x52   :  { %p2579_p10 = por %p2578_p9, %p2577_p8 }
  0x54   :  { %p2580_p11 = pnand %p2579_p10, %p2573_p7 }
  0x56   :  { %2583 = shalt.err (!%p2580_p11)
}
  0x57   :  { %59 = dma.hbm_to_vmem [thread:$0]  %s3167_s2, 256, %s54_s13, [#allocation6], %s2710_s29, %s2710_s29, %s2711_s30  }
  0x58   :  { %s2584_s24 = scalar_lea.hbm %s3169_s4, 512 }
  0x59   :  { %p2585_p12 = scmp.ne.s32.totalorder %s3169_s4, %s2584_s24  ;;  %p2588_p13 = scmp.lt.u32.totalorder %s2584_s24, %s3169_s4 }
  0x5b   :  { %p2590_p0 = pnand %p2588_p13, %p2585_p12 }
  0x5d   :  { %2593 = shalt.err (!%p2590_p0)
}
  0x5e   :  { %s2594_s12 = scalar_lea.vmem %s2859_s15, 512  ;;  %p2599_p2 = scmp.lt.s32.totalorder %s2859_s15, %s2859_s15 }
  0x5f   :  { %p2595_p1 = scmp.ne.s32.totalorder %s2859_s15, %s2594_s12  ;;  %p2600_p3 = scmp.lt.s32.totalorder %s2594_s12, %s2594_s12 }
  0x61   :  { %p2601_p4 = por %p2600_p3, %p2599_p2 }
  0x63   :  { %p2602_p5 = pnand %p2601_p4, %p2595_p1 }
  0x65   :  { %2605 = shalt.err (!%p2602_p5)
}
  0x66   :  { %83 = dma.hbm_to_vmem [thread:$0]  %s3169_s4, 512, %s2859_s15, [#allocation9], %s2710_s29, %s2710_s29, %s2711_s30  }
  0x67   :  { %s2716_s14 = smov [#allocation13]   ;;  %s2717_s17 = smov [#allocation14]  }
  0x68   :  { %s101_s16 = sshll.u32 %s2716_s14, 4  ;;  %s113_s3 = sshll.u32 %s2717_s17, 4  ;;  %s102_s16 = int_to_ptr.vmem [resolvable:$true] %s101_s16  ;;  %s2896_s3 = int_to_ptr.vmem [resolvable:$true] %s113_s3 }
  0x69   :  { %s2606_s21 = scalar_lea.hbm %s3171_s6, 512 }
  0x6a   :  { %p2607_p6 = scmp.ne.s32.totalorder %s3171_s6, %s2606_s21  ;;  %p2610_p7 = scmp.lt.u32.totalorder %s2606_s21, %s3171_s6 }
  0x6c   :  { %p2612_p8 = pnand %p2610_p7, %p2607_p6 }
  0x6e   :  { %2615 = shalt.err (!%p2612_p8)
}
  0x6f   :  { %s2616_s4 = scalar_lea.vmem %s102_s16, 512  ;;  %p2621_p10 = scmp.lt.s32.totalorder %s102_s16, %s102_s16 }
  0x70   :  { %p2617_p9 = scmp.ne.s32.totalorder %s102_s16, %s2616_s4  ;;  %p2622_p11 = scmp.lt.s32.totalorder %s2616_s4, %s2616_s4 }
  0x72   :  { %p2623_p12 = por %p2622_p11, %p2621_p10 }
  0x74   :  { %p2624_p13 = pnand %p2623_p12, %p2617_p9 }
  0x76   :  { %2627 = shalt.err (!%p2624_p13)
}
  0x77   :  { %107 = dma.hbm_to_vmem [thread:$0]  %s3171_s6, 512, %s102_s16, [#allocation12], %s2710_s29, %s2710_s29, %s2711_s30  }
  0x78   :  { %s2628_s26 = scalar_lea.hbm %s3172_s7, 512 }
  0x79   :  { %p2629_p0 = scmp.ne.s32.totalorder %s3172_s7, %s2628_s26  ;;  %p2632_p1 = scmp.lt.u32.totalorder %s2628_s26, %s3172_s7 }
  0x7b   :  { %p2634_p2 = pnand %p2632_p1, %p2629_p0 }
  0x7d   :  { %2637 = shalt.err (!%p2634_p2)
}
  0x7e   :  { %s2638_s2 = scalar_lea.vmem %s2896_s3, 512  ;;  %p2643_p4 = scmp.lt.s32.totalorder %s2896_s3, %s2896_s3 }
  0x7f   :  { %p2639_p3 = scmp.ne.s32.totalorder %s2896_s3, %s2638_s2  ;;  %p2644_p5 = scmp.lt.s32.totalorder %s2638_s2, %s2638_s2 }
  0x81   :  { %p2645_p6 = por %p2644_p5, %p2643_p4 }
  0x83   :  { %p2646_p7 = pnand %p2645_p6, %p2639_p3 }
  0x85   :  { %2649 = shalt.err (!%p2646_p7)
}
  0x86   :  { %119 = dma.hbm_to_vmem [thread:$0]  %s3172_s7, 512, %s2896_s3, [#allocation15], %s2710_s29, %s2710_s29, %s2711_s30  }
  0x87   :  { %2694 = dma.done.wait [#allocation3], 256  }
  0x88   :  { %2695 = vsyncadd [#allocation3], 4294967040 }
  0x89   :  { %2696 = dma.done.wait [#allocation6], 512  }
  0x8a   :  { %2697 = vsyncadd [#allocation6], 4294966784 }
  0x8b   :  { %2698 = dma.done.wait [#allocation9], 768  }
  0x8c   :  { %2699 = vsyncadd [#allocation9], 4294966528 }
  0x8d   :  { %2700 = dma.done.wait [#allocation12], 1024  }
  0x8e   :  { %2701 = vsyncadd [#allocation12], 4294966272 }
  0x8f   :  { %2702 = dma.done.wait [#allocation15], 512  }
  0x90   :  { %2703 = vsyncadd [#allocation15], 4294966784  ;;  %v154_v0 = vld [vmem:[#allocation10] sm:$0xff]  ;;  %v155_v1 = vld [vmem:[#allocation10 + $0x8] sm:$0xff]  ;;  %vm158_vm0 = vcmask 261120   ;;  %v2718_v16 = vmov 0.0  }
  0x91   :  { %v240_v2 = vld [vmem:[#allocation11] sm:$0xff]  ;;  %v2391_v3 = vpack.c.bf16 %v155_v1, %v154_v0  ;;  %v241_v4 = vld [vmem:[#allocation11 + $0x8] sm:$0xff]  ;;  %v156_v5 = vld [vmem:[#allocation10 + $0x10] sm:$0xff]  ;;  %vm2719_vm1 = vmmov 0   ;;  %vm414_vm2 = vcmask 64512   ;;  %s2720_s7 = smov 120  }
  0x92   :  { %v157_v6 = vld [vmem:[#allocation10 + $0x18] sm:$0xff]  ;;  %v2399_v7 = vpack.c.bf16 %v241_v4, %v240_v2  ;;  %v242_v9 = vld [vmem:[#allocation11 + $0x10] sm:$0xff]  ;;  %v2933_v11 = vld [vmem:[#allocation2] sm:$0xff]  ;;  %s2721_s14 = smov 112   ;;  %s2722_s16 = smov 104  }
  0x93   :  { %v2395_v8 = vpack.c.bf16 %v157_v6, %v156_v5  ;;  %v243_v10 = vld [vmem:[#allocation11 + $0x18] sm:$0xff]  ;;  %2392 = vmatprep.subr.bf16.mxu0 %v2391_v3  ;;  %2266 = vmatprep.mubr.msk.f32.mxu0 %vm158_vm0, %v2933_v11  ;;  %v150_v13 = vld [vmem:[#allocation5] sm:$0xff]  ;;  %v2938_v14 = vld [vmem:[#allocation2 + $0x8] sm:$0xff]  ;;  %s2723_s17 = smov [#allocation17]  }
  0x94   :  { %v2403_v12 = vpack.c.bf16 %v243_v10, %v242_v9  ;;  %2400 = vmatprep.subr.bf16.mxu1 %v2399_v7  ;;  %2394 = vmatpush3.bf16.msra.mxu0 %v2391_v3  ;;  %v151_v15 = vld [vmem:[#allocation5 + $0x8] sm:$0xff]  ;;  %v325_v23 = vld [vmem:[#allocation13] sm:$0xff]  ;;  %v326_v24 = vld [vmem:[#allocation13 + $0x8] sm:$0xff]  ;;  %s2136_s3 = sshll.u32 %s2723_s17, 4  ;;  %s2137_s3 = int_to_ptr.vmem [resolvable:$true] %s2136_s3 }
  0x95   :  { %2402 = vmatpush3.bf16.msra.mxu1 %v2399_v7  ;;  %2396 = vmatprep.subr.bf16.mxu0 %v2395_v8  ;;  %v327_v25 = vld [vmem:[#allocation13 + $0x10] sm:$0xff]  ;;  %v2407_v26 = vpack.c.bf16 %v326_v24, %v325_v23  ;;  %v328_v27 = vld [vmem:[#allocation13 + $0x18] sm:$0xff]  ;;  %v152_v28 = vld [vmem:[#allocation7] sm:$0xff]  ;;  %s2650_s20 = scalar_lea.vmem %s2137_s3, 1024  ;;  %p2655_p9 = scmp.lt.s32.totalorder %s2137_s3, %s2137_s3 }
  0x96   :  { %2404 = vmatprep.subr.bf16.mxu1 %v2403_v12  ;;  %2277 = vmatprep.mubr.msk.f32.mxu1 %vm158_vm0, %v150_v13  ;;  %v2411_v29 = vpack.c.bf16 %v328_v27, %v327_v25  ;;  %v153_v30 = vld [vmem:[#allocation7 + $0x8] sm:$0xff]  ;;  %v2973_v31 = vld [vmem:[#allocation8] sm:$0xff]  ;;  %v2976_v35 = vld [vmem:[#allocation8 + $0x8] sm:$0xff]  ;;  %p2651_p8 = scmp.ne.s32.totalorder %s2137_s3, %s2650_s20  ;;  %p2656_p10 = scmp.lt.s32.totalorder %s2650_s20, %s2650_s20 }
  0x98   :  { %2398 = vmatpush3.bf16.msra.mxu0 %v2395_v8  ;;  %p2657_p11 = por %p2656_p10, %p2655_p9 }
  0x99   :  { %2406 = vmatpush3.bf16.msra.mxu1 %v2403_v12  ;;  %2408 = vmatprep.subr.bf16.mxu0 %v2407_v26 }
  0x9a   :  { %2291 = vmatprep.subr.mxu1 %v2718_v16  ;;  %p2658_p12 = pnand %p2657_p11, %p2651_p8 }
  0x9b   :  { %2267 = vmatmul.mubr.msk.f32.vlgmr.msra.gmra.mrb[0].mxu0 %vm158_vm0, %v2938_v14 }
  0x9c   :  { %2278 = vmatmul.mubr.msk.f32.vlgmr.msra.gmra.mrb[0].mxu1 %vm158_vm0, %v151_v15  ;;  %2288 = vmatprep.mubr.msk.f32.mxu0 %vm158_vm0, %v152_v28 }
  0x9d   :  { %2293 = vmatprep.mubr.msk.f32.mxu1 %vm2719_vm1, %v2718_v16  ;;  %2410 = vmatpush3.bf16.msra.mxu0 %v2407_v26 }
  0x9e   :  { %2412 = vmatprep.subr.bf16.mxu0 %v2411_v29 }
  0xa1   :  { %2414 = vmatpush3.bf16.msra.mxu0 %v2411_v29 }
  0xa2   :  { %2311 = vmatprep.subr.mxu0 %v2718_v16 }
  0xa4   :  { %2289 = vmatmul.mubr.msk.f32.vlgmr.msra.gmra.mrb[2].mxu0 %vm158_vm0, %v153_v30 }
  0xa5   :  { %2313 = vmatprep.mubr.msk.f32.mxu0 %vm2719_vm1, %v2718_v16 }
 0x16e   :  { %v2268_v17 = vpop.f32.mrb[0].mxu0 }
 0x16f   :  { %v2946_v18 = vpop.f32.mrb[0].mxu1  ;;  %v231_v19 = vpop.f32.mrb[1].mxu0  ;;  %v2961_v22 = vmul.f32 0.35355338, %v2268_v17 }
 0x170   :  { %v2948_v20 = vmul.f32 0.35355338, %v231_v19  ;;  %v2950_v21 = vpop.f32.mrb[1].mxu1 }
 0x171   :  { %2292 = vmatpush3.xpose.msk.msra.mxu1 %vm414_vm2, %v2950_v21 }
 0x172   :  { %2296 = vmatprep.subr.mxu1 %v2718_v16 }
 0x174   :  { %2294 = vmatmul.mubr.msk.f32.vlgmr.msra.gmra.mrb[2].mxu1 %vm414_vm2, %v2948_v20 }
 0x175   :  { %2297 = vmatpush3.xpose.msk.msra.mxu1 %vm414_vm2, %v2946_v18  ;;  %2298 = vmatprep.mubr.msk.f32.mxu1 %vm2719_vm1, %v2718_v16 }
 0x176   :  { %2301 = vmatprep.subr.mxu1 %v2718_v16 }
 0x177   :  { %v2987_v51 = vpop.f32.mrb[2].mxu0 }
 0x178   :  { %2299 = vmatmul.mubr.msk.f32.vlgmr.msra.gmra.mrb[4].mxu1 %vm414_vm2, %v2961_v22  ;;  %v2989_v52 = vpop.f32.mrb[3].mxu0 }
 0x179   :  { %2303 = vmatprep.mubr.msk.f32.mxu1 %vm2719_vm1, %v2718_v16  ;;  %2302 = vmatpush3.msra.mxu1 %v2989_v52 }
 0x17a   :  { %2306 = vmatprep.subr.mxu1 %v2718_v16 }
 0x247   :  { %v487_v32 = vpop.f32.mrb[2].mxu1 }
 0x248   :  { %v488_v33 = vadd.f32 %v487_v32, %v2973_v31  ;;  %v2295_v34 = vpop.f32.mrb[3].mxu1 }
 0x24a   :  { %v567_v36 = vsel %vm414_vm2, %v488_v33, -inf }
 0x24b   :  { %568 = vmax.xlane.f32.xlu0 %v567_v36  ;;  %v563_v37 = vpop.f32.mrb[4].mxu1 }
 0x24c   :  { %v564_v38 = vadd.f32 %v563_v37, %v2976_v35  ;;  %v2300_v39 = vpop.f32.mrb[5].mxu1 }
 0x24e   :  { %v570_v40 = vsel %vm414_vm2, %v564_v38, -inf }
 0x24f   :  { %571 = vmax.xlane.f32.xlu0 %v570_v40 }
 0x265   :  { %818 = vrot.lane.b32.xlu0 %v2946_v18, %s2720_s7 }
 0x2d8   :  { %v569_v41 = vpop.xlane.xlu0 %568 }
 0x2d9   :  { %v573_v42 = vsub.f32 %v488_v33, %v569_v41 }
 0x2db   :  { %v575_v43 = vmul.f32 1.442695, %v573_v42 }
 0x2dc   :  { %v572_v44 = vpop.xlane.xlu0 %571 }
 0x2dd   :  { %2438 = vpow2.f32 %v575_v43  ;;  %v574_v45 = vsub.f32 %v564_v38, %v572_v44 }
 0x2df   :  { %v577_v46 = vmul.f32 1.442695, %v574_v45 }
 0x2e0   :  { %v819_v62 = vpop.permute.xlu0 %818 }
 0x2e1   :  { %2440 = vpow2.f32 %v577_v46 }
 0x2e7   :  { %v2439_v47 = vpop.eup %2438 }
 0x2e8   :  { %v579_v48 = vsel %vm414_vm2, %v2439_v47, 0.0 }
 0x2e9   :  { %580 = vadd.xlane.f32.xlu1 %v579_v48 }
 0x2eb   :  { %v2441_v49 = vpop.eup %2440 }
 0x2ec   :  { %v582_v50 = vsel %vm414_vm2, %v2441_v49, 0.0 }
 0x2ed   :  { %583 = vadd.xlane.f32.xlu1 %v582_v50  ;;  %v1073_v50 = vld [vmem:[#allocation14 + $0x8] sm:$0xff] }
 0x2fe   :  { %816 = vrot.lane.b32.xlu1 %v2961_v22, %s2720_s7 }
 0x302   :  { %740 = vrot.lane.b32.xlu1 %v2950_v21, %s2720_s7 }
 0x306   :  { %738 = vrot.lane.b32.xlu1 %v2948_v20, %s2720_s7 }
 0x30a   :  { %1238 = vrot.lane.b32.xlu1 %v2950_v21, %s2721_s14 }
 0x376   :  { %v581_v53 = vpop.xlane.xlu1 %580 }
 0x377   :  { %2442 = vrcp.f32 %v581_v53  ;;  %v737_v53 = vld [vmem:[#allocation14] sm:$0xff] }
 0x37a   :  { %v584_v54 = vpop.xlane.xlu1 %583 }
 0x37b   :  { %2444 = vrcp.f32 %v584_v54 }
 0x37e   :  { %v817_v55 = vpop.permute.xlu1 %816 }
 0x381   :  { %v2443_v56 = vpop.eup %2442 }
 0x382   :  { %v587_v57 = vmul.f32 %v2443_v56, %v2439_v47  ;;  %v741_v58 = vpop.permute.xlu1 %740 }
 0x383   :  { %2312 = vmatpush3.xpose.msk.msra.mxu0 %vm414_vm2, %v741_v58 }
 0x384   :  { %589 = vst.msk [vmem:[#allocation17] sm:$0xff] %vm414_vm2, %v587_v57  ;;  %2304 = vmatmul.mubr.msk.f32.vlgmr.msra.gmra.mrb[6].mxu1 %vm414_vm2, %v587_v57  ;;  %2321 = vmatprep.subr.mxu0 %v2718_v16 }
 0x385   :  { %v2445_v59 = vpop.eup %2444  ;;  %2307 = vmatpush3.msra.mxu1 %v2987_v51  ;;  %2308 = vmatprep.mubr.msk.f32.mxu1 %vm2719_vm1, %v2718_v16 }
 0x386   :  { %v588_v60 = vmul.f32 %v2445_v59, %v2441_v49  ;;  %v739_v61 = vpop.permute.xlu1 %738  ;;  %2316 = vmatprep.subr.mxu1 %v2718_v16 }
 0x387   :  { %2314 = vmatmul.mubr.msk.f32.vlgmr.msra.gmra.mrb[4].mxu0 %vm414_vm2, %v739_v61 }
 0x388   :  { %590 = vst.msk [vmem:[#allocation17 + $0x20] sm:$0xff] %vm414_vm2, %v588_v60  ;;  %2309 = vmatmul.mubr.msk.f32.vlgmr.msra.gmra.mrb[8].mxu1 %vm414_vm2, %v588_v60  ;;  %2323 = vmatprep.mubr.msk.f32.mxu0 %vm2719_vm1, %v2718_v16 }
 0x389   :  { %2318 = vmatprep.mubr.msk.f32.mxu1 %vm2719_vm1, %v2718_v16 }
 0x38a   :  { %v1239_v24 = vpop.permute.xlu1 %1238 }
 0x38c   :  { %2317 = vmatpush3.xpose.msk.msra.mxu1 %vm414_vm2, %v819_v62 }
 0x38d   :  { %2326 = vmatprep.subr.mxu1 %v2718_v16 }
 0x38f   :  { %2319 = vmatmul.mubr.msk.f32.vlgmr.msra.gmra.mrb[10].mxu1 %vm414_vm2, %v817_v55 }
 0x390   :  { %2328 = vmatprep.mubr.msk.f32.mxu1 %vm2719_vm1, %v2718_v16 }
 0x457   :  { %v3019_v63 = vpop.f32.mrb[6].mxu1 }
 0x458   :  { %v2305_v0 = vpop.f32.mrb[7].mxu1 }
 0x45a   :  { %v812_v1 = vpop.f32.mrb[4].mxu0 }
 0x45b   :  { %v3021_v2 = vpop.f32.mrb[8].mxu1  ;;  %v2315_v3 = vpop.f32.mrb[5].mxu0  ;;  %v813_v19 = vadd.f32 %v812_v1, %v2973_v31 }
 0x45c   :  { %v2310_v4 = vpop.f32.mrb[9].mxu1 }
 0x45d   :  { %v894_v23 = vsel %vm414_vm2, %v813_v19, -inf }
 0x462   :  { %v890_v5 = vpop.f32.mrb[10].mxu1 }
 0x463   :  { %v891_v6 = vadd.f32 %v890_v5, %v2976_v35  ;;  %v2320_v7 = vpop.f32.mrb[11].mxu1  ;;  %v1569_v5 = vld [vmem:[#allocation14 + $0x10] sm:$0xff] }
 0x465   :  { %v897_v8 = vsel %vm414_vm2, %v891_v6, -inf }
 0x466   :  { %898 = vmax.xlane.f32.xlu0 %v897_v8 }
 0x47c   :  { %997 = vrot.lane.b32.xlu0 %v2987_v51, %s2720_s7 }
 0x480   :  { %1236 = vrot.lane.b32.xlu0 %v2948_v20, %s2721_s14 }
 0x484   :  { %1314 = vrot.lane.b32.xlu0 %v2961_v22, %s2721_s14 }
 0x4f3   :  { %v899_v9 = vpop.xlane.xlu0 %898 }
 0x4f4   :  { %v901_v10 = vsub.f32 %v891_v6, %v899_v9 }
 0x4f6   :  { %v904_v12 = vmul.f32 1.442695, %v901_v10 }
 0x4f7   :  { %v998_v13 = vpop.permute.xlu0 %997 }
 0x4f8   :  { %2446 = vpow2.f32 %v904_v12  ;;  %2327 = vmatpush3.msra.mxu1 %v998_v13 }
 0x4f9   :  { %2341 = vmatprep.subr.mxu1 %v2718_v16 }
 0x4fb   :  { %v1237_v28 = vpop.permute.xlu0 %1236 }
 0x4ff   :  { %v1315_v30 = vpop.permute.xlu0 %1314 }
 0x502   :  { %v2447_v15 = vpop.eup %2446 }
 0x503   :  { %v909_v17 = vsel %vm414_vm2, %v2447_v15, 0.0 }
 0x504   :  { %910 = vadd.xlane.f32.xlu1 %v909_v17 }
 0x515   :  { %1316 = vrot.lane.b32.xlu1 %v2946_v18, %s2721_s14 }
 0x539   :  { %895 = vmax.xlane.f32.xlu1 %v894_v23 }
 0x591   :  { %v911_v25 = vpop.xlane.xlu1 %910 }
 0x592   :  { %2448 = vrcp.f32 %v911_v25 }
 0x595   :  { %v1317_v29 = vpop.permute.xlu1 %1316 }
 0x59c   :  { %v2449_v26 = vpop.eup %2448 }
 0x59d   :  { %v915_v27 = vmul.f32 %v2449_v26, %v2447_v15 }
 0x59f   :  { %918 = vst.msk [vmem:[#allocation17 + $0x28] sm:$0xff] %vm414_vm2, %v915_v27  ;;  %2329 = vmatmul.mubr.msk.f32.vlgmr.msra.gmra.mrb[12].mxu1 %vm414_vm2, %v915_v27 }
 0x5a0   :  { %2342 = vmatpush3.xpose.msk.msra.mxu1 %vm414_vm2, %v1239_v24  ;;  %2343 = vmatprep.mubr.msk.f32.mxu1 %vm2719_vm1, %v2718_v16 }
 0x5a1   :  { %2346 = vmatprep.subr.mxu1 %v2718_v16 }
 0x5a3   :  { %2344 = vmatmul.mubr.msk.f32.vlgmr.msra.gmra.mrb[14].mxu1 %vm414_vm2, %v1237_v28 }
 0x5a4   :  { %2347 = vmatpush3.xpose.msk.msra.mxu1 %vm414_vm2, %v1317_v29  ;;  %2348 = vmatprep.mubr.msk.f32.mxu1 %vm2719_vm1, %v2718_v16 }
 0x5a5   :  { %2356 = vmatprep.subr.mxu1 %v2718_v16 }
 0x5a7   :  { %2349 = vmatmul.mubr.msk.f32.vlgmr.msra.gmra.mrb[16].mxu1 %vm414_vm2, %v1315_v30 }
 0x5a8   :  { %2358 = vmatprep.mubr.msk.f32.mxu1 %vm2719_vm1, %v2718_v16 }
 0x5c6   :  { %v896_v32 = vpop.xlane.xlu1 %895 }
 0x5c7   :  { %v900_v33 = vsub.f32 %v813_v19, %v896_v32 }
 0x5c9   :  { %v902_v34 = vmul.f32 1.442695, %v900_v33 }
 0x5cb   :  { %2450 = vpow2.f32 %v902_v34 }
 0x5d5   :  { %v2451_v36 = vpop.eup %2450 }
 0x5d6   :  { %v906_v37 = vsel %vm414_vm2, %v2451_v36, 0.0 }
 0x5d7   :  { %907 = vadd.xlane.f32.xlu0 %v906_v37 }
 0x5ed   :  { %920 = vrot.lane.b32.xlu0 %v2989_v52, %s2720_s7 }
 0x5f1   :  { %1493 = vrot.lane.b32.xlu0 %v2987_v51, %s2721_s14 }
 0x5f5   :  { %1655 = vrot.lane.b32.xlu0 %v2950_v21, %s2722_s16 }
 0x5f9   :  { %1733 = vrot.lane.b32.xlu0 %v2946_v18, %s2722_s16 }
 0x5fd   :  { %1653 = vrot.lane.b32.xlu0 %v2948_v20, %s2722_s16 }
 0x664   :  { %v908_v38 = vpop.xlane.xlu0 %907 }
 0x665   :  { %2452 = vrcp.f32 %v908_v38 }
 0x668   :  { %v921_v39 = vpop.permute.xlu0 %920 }
 0x669   :  { %2322 = vmatpush3.msra.mxu0 %v921_v39 }
 0x66a   :  { %2331 = vmatprep.subr.mxu0 %v1073_v50 }
 0x66c   :  { %v1494_v40 = vpop.permute.xlu0 %1493 }
 0x66d   :  { %2357 = vmatpush3.msra.mxu1 %v1494_v40 }
 0x66e   :  { %2366 = vmatprep.subr.mxu1 %v2718_v16 }
 0x66f   :  { %v2453_v41 = vpop.eup %2452 }
 0x670   :  { %v914_v42 = vmul.f32 %v2453_v41, %v2451_v36  ;;  %v1656_v7 = vpop.permute.xlu0 %1655 }
 0x672   :  { %917 = vst.msk [vmem:[#allocation17 + $0x8] sm:$0xff] %vm414_vm2, %v914_v42  ;;  %2324 = vmatmul.mubr.msk.f32.vlgmr.msra.gmra.mrb[6].mxu0 %vm414_vm2, %v914_v42  ;;  %v1069_v21 = vpop.f32.mrb[12].mxu1 }
 0x673   :  { %v2330_v43 = vpop.f32.mrb[13].mxu1  ;;  %2332 = vmatpush3.msra.mxu0 %v1073_v50 }
 0x674   :  { %2336 = vmatprep.subr.mxu0 %v737_v53 }
 0x676   :  { %v1310_v18 = vpop.f32.mrb[14].mxu1 }
 0x677   :  { %v1311_v44 = vadd.f32 %v1310_v18, %v2973_v31  ;;  %v2345_v20 = vpop.f32.mrb[15].mxu1 }
 0x679   :  { %v1392_v45 = vsel %vm414_vm2, %v1311_v44, -inf }
 0x67a   :  { %1393 = vmax.xlane.f32.xlu1 %v1392_v45  ;;  %v1388_v46 = vpop.f32.mrb[16].mxu1  ;;  %v1986_v45 = vld [vmem:[#allocation14 + $0x18] sm:$0xff] }
 0x67b   :  { %v1389_v47 = vadd.f32 %v1388_v46, %v2976_v35  ;;  %v2350_v48 = vpop.f32.mrb[17].mxu1 }
 0x67d   :  { %v1395_v49 = vsel %vm414_vm2, %v1389_v47, -inf }
 0x67e   :  { %1396 = vmax.xlane.f32.xlu1 %v1395_v49 }
 0x707   :  { %v1394_v54 = vpop.xlane.xlu1 %1393 }
 0x708   :  { %v1398_v55 = vsub.f32 %v1311_v44, %v1394_v54 }
 0x70a   :  { %v1400_v56 = vmul.f32 1.442695, %v1398_v55 }
 0x70b   :  { %v1397_v57 = vpop.xlane.xlu1 %1396 }
 0x70c   :  { %2454 = vpow2.f32 %v1400_v56  ;;  %v1399_v58 = vsub.f32 %v1389_v47, %v1397_v57 }
 0x70e   :  { %v1402_v59 = vmul.f32 1.442695, %v1399_v58 }
 0x710   :  { %2456 = vpow2.f32 %v1402_v59 }
 0x716   :  { %v2455_v60 = vpop.eup %2454 }
 0x717   :  { %v1404_v61 = vsel %vm414_vm2, %v2455_v60, 0.0 }
 0x718   :  { %1405 = vadd.xlane.f32.xlu1 %v1404_v61 }
 0x71a   :  { %v2457_v62 = vpop.eup %2456 }
 0x71b   :  { %v1407_v0 = vsel %vm414_vm2, %v2457_v62, 0.0 }
 0x71c   :  { %1408 = vadd.xlane.f32.xlu1 %v1407_v0 }
 0x72d   :  { %1417 = vrot.lane.b32.xlu1 %v2989_v52, %s2721_s14 }
 0x731   :  { %1731 = vrot.lane.b32.xlu1 %v2961_v22, %s2722_s16 }
 0x745   :  { %v992_v1 = vpop.f32.mrb[6].mxu0 }
 0x746   :  { %v2325_v3 = vpop.f32.mrb[7].mxu0  ;;  %2333 = vmatprep.mubr.msk.f32.mxu0 %vm414_vm2, %v992_v1 }
 0x747   :  { %2334 = vmatmul.mubr.msk.f32.vlgmr.msra.gmra.mrb[8].mxu0 %vm414_vm2, %v1069_v21 }
 0x748   :  { %2338 = vmatprep.mubr.msk.f32.mxu0 %vm414_vm2, %v3019_v63  ;;  %2337 = vmatpush3.msra.mxu0 %v737_v53 }
 0x749   :  { %2351 = vmatprep.subr.mxu0 %v2718_v16 }
 0x74f   :  { %2339 = vmatmul.mubr.msk.f32.vlgmr.msra.gmra.mrb[8].mxu0 %vm414_vm2, %v3021_v2  ;;  %v1734_v2 = vpop.permute.xlu0 %1733 }
 0x750   :  { %2353 = vmatprep.mubr.msk.f32.mxu0 %vm2719_vm1, %v2718_v16 }
 0x753   :  { %v1654_v12 = vpop.permute.xlu0 %1653 }
 0x7a5   :  { %v1406_v4 = vpop.xlane.xlu1 %1405 }
 0x7a6   :  { %2458 = vrcp.f32 %v1406_v4 }
 0x7a9   :  { %v1409_v22 = vpop.xlane.xlu1 %1408 }
 0x7aa   :  { %2460 = vrcp.f32 %v1409_v22 }
 0x7ad   :  { %v1418_v6 = vpop.permute.xlu1 %1417 }
 0x7ae   :  { %2352 = vmatpush3.msra.mxu0 %v1418_v6 }
 0x7af   :  { %2361 = vmatprep.subr.mxu0 %v1569_v5 }
 0x7b0   :  { %v2459_v8 = vpop.eup %2458 }
 0x7b1   :  { %v1412_v63 = vmul.f32 %v2459_v8, %v2455_v60  ;;  %v1732_v23 = vpop.permute.xlu1 %1731 }
 0x7b3   :  { %1415 = vst.msk [vmem:[#allocation17 + $0x10] sm:$0xff] %vm414_vm2, %v1412_v63  ;;  %2354 = vmatmul.mubr.msk.f32.vlgmr.msra.gmra.mrb[10].mxu0 %vm414_vm2, %v1412_v63 }
 0x7b4   :  { %v2461_v9 = vpop.eup %2460  ;;  %2362 = vmatpush3.msra.mxu0 %v1569_v5 }
 0x7b5   :  { %v1413_v10 = vmul.f32 %v2461_v9, %v2457_v62  ;;  %2371 = vmatprep.subr.mxu0 %v2718_v16 }
 0x7b7   :  { %1416 = vst.msk [vmem:[#allocation17 + $0x30] sm:$0xff] %vm414_vm2, %v1413_v10  ;;  %2359 = vmatmul.mubr.msk.f32.vlgmr.msra.gmra.mrb[18].mxu1 %vm414_vm2, %v1413_v10 }
 0x7b8   :  { %2367 = vmatpush3.xpose.msk.msra.mxu1 %vm414_vm2, %v1656_v7  ;;  %2368 = vmatprep.mubr.msk.f32.mxu1 %vm2719_vm1, %v2718_v16 }
 0x7b9   :  { %2376 = vmatprep.subr.mxu1 %v2718_v16 }
 0x7bb   :  { %2369 = vmatmul.mubr.msk.f32.vlgmr.msra.gmra.mrb[20].mxu1 %vm414_vm2, %v1654_v12 }
 0x7bc   :  { %2378 = vmatprep.mubr.msk.f32.mxu1 %vm2719_vm1, %v2718_v16 }
 0x886   :  { %v1489_v13 = vpop.f32.mrb[10].mxu0 }
 0x887   :  { %v2355_v15 = vpop.f32.mrb[11].mxu0  ;;  %2363 = vmatprep.mubr.msk.f32.mxu0 %vm414_vm2, %v1489_v13 }
 0x88a   :  { %v1565_v17 = vpop.f32.mrb[18].mxu1 }
 0x88b   :  { %v2360_v19 = vpop.f32.mrb[19].mxu1  ;;  %2364 = vmatmul.mubr.msk.f32.vlgmr.msra.gmra.mrb[8].mxu0 %vm414_vm2, %v1565_v17 }
 0x88c   :  { %2372 = vmatpush3.xpose.msk.msra.mxu0 %vm414_vm2, %v1734_v2  ;;  %2373 = vmatprep.mubr.msk.f32.mxu0 %vm2719_vm1, %v2718_v16 }
 0x88d   :  { %2381 = vmatprep.subr.mxu0 %v2718_v16 }
 0x88e   :  { %v1727_v24 = vpop.f32.mrb[20].mxu1 }
 0x88f   :  { %v1728_v25 = vadd.f32 %v1727_v24, %v2973_v31  ;;  %v2370_v26 = vpop.f32.mrb[21].mxu1  ;;  %2374 = vmatmul.mubr.msk.f32.vlgmr.msra.gmra.mrb[12].mxu0 %vm414_vm2, %v1732_v23 }
 0x890   :  { %2383 = vmatprep.mubr.msk.f32.mxu0 %vm2719_vm1, %v2718_v16 }
 0x891   :  { %v1809_v27 = vsel %vm414_vm2, %v1728_v25, -inf }
 0x892   :  { %1810 = vmax.xlane.f32.xlu0 %v1809_v27 }
 0x91f   :  { %v1811_v28 = vpop.xlane.xlu0 %1810 }
 0x920   :  { %v1815_v29 = vsub.f32 %v1728_v25, %v1811_v28 }
 0x922   :  { %v1817_v30 = vmul.f32 1.442695, %v1815_v29 }
 0x924   :  { %2462 = vpow2.f32 %v1817_v30 }
 0x92e   :  { %v2463_v32 = vpop.eup %2462 }
 0x92f   :  { %v1821_v33 = vsel %vm414_vm2, %v2463_v32, 0.0 }
 0x930   :  { %1822 = vadd.xlane.f32.xlu0 %v1821_v33 }
 0x962   :  { %v1805_v34 = vpop.f32.mrb[12].mxu0 }
 0x963   :  { %v1806_v31 = vadd.f32 %v1805_v34, %v2976_v35  ;;  %v2375_v36 = vpop.f32.mrb[13].mxu0 }
 0x965   :  { %v1812_v37 = vsel %vm414_vm2, %v1806_v31, -inf }
 0x966   :  { %1813 = vmax.xlane.f32.xlu1 %v1812_v37 }
 0x977   :  { %1910 = vrot.lane.b32.xlu1 %v2987_v51, %s2722_s16 }
 0x9bd   :  { %v1823_v16 = vpop.xlane.xlu0 %1822 }
 0x9be   :  { %2464 = vrcp.f32 %v1823_v16 }
 0x9c8   :  { %v2465_v38 = vpop.eup %2464 }
 0x9c9   :  { %v1829_v39 = vmul.f32 %v2465_v38, %v2463_v32 }
 0x9cb   :  { %1832 = vst.msk [vmem:[#allocation17 + $0x18] sm:$0xff] %vm414_vm2, %v1829_v39 }
 0x9f3   :  { %v1814_v40 = vpop.xlane.xlu1 %1813 }
 0x9f4   :  { %v1816_v41 = vsub.f32 %v1806_v31, %v1814_v40 }
 0x9f6   :  { %v1819_v42 = vmul.f32 1.442695, %v1816_v41 }
 0x9f7   :  { %v1911_v21 = vpop.permute.xlu1 %1910 }
 0x9f8   :  { %2466 = vpow2.f32 %v1819_v42  ;;  %2382 = vmatpush3.msra.mxu0 %v1911_v21 }
 0x9f9   :  { %2386 = vmatprep.subr.mxu0 %v1986_v45 }
 0xa02   :  { %v2467_v35 = vpop.eup %2466 }
 0xa03   :  { %v1824_v43 = vsel %vm414_vm2, %v2467_v35, 0.0 }
 0xa04   :  { %1825 = vadd.xlane.f32.xlu0 %v1824_v43 }
 0xa1a   :  { %1834 = vrot.lane.b32.xlu0 %v2989_v52, %s2722_s16 }
 0xa91   :  { %v1826_v51 = vpop.xlane.xlu0 %1825 }
 0xa92   :  { %2468 = vrcp.f32 %v1826_v51 }
 0xa95   :  { %v1835_v18 = vpop.permute.xlu0 %1834 }
 0xa96   :  { %2377 = vmatpush3.msra.mxu1 %v1835_v18 }
 0xa97   :  { %2379 = vmatmul.mubr.msk.f32.vlgmr.msra.gmra.mrb[22].mxu1 %vm414_vm2, %v1829_v39 }
 0xa9c   :  { %v2469_v44 = vpop.eup %2468 }
 0xa9d   :  { %v1830_v20 = vmul.f32 %v2469_v44, %v2467_v35 }
 0xa9f   :  { %1833 = vst.msk [vmem:[#allocation17 + $0x38] sm:$0xff] %vm414_vm2, %v1830_v20  ;;  %2384 = vmatmul.mubr.msk.f32.vlgmr.msra.gmra.mrb[14].mxu0 %vm414_vm2, %v1830_v20 }
 0xaa0   :  { %2387 = vmatpush3.msra.mxu0 %v1986_v45 }
 0xb6a   :  { %v1906_v46 = vpop.f32.mrb[22].mxu1 }
 0xb6b   :  { %v2380_v47 = vpop.f32.mrb[23].mxu1  ;;  %2388 = vmatprep.mubr.msk.f32.mxu0 %vm414_vm2, %v1906_v46 }
 0xb72   :  { %v1982_v52 = vpop.f32.mrb[14].mxu0 }
 0xb73   :  { %v2385_v48 = vpop.f32.mrb[15].mxu0  ;;  %2389 = vmatmul.mubr.msk.f32.vlgmr.msra.gmra.mrb[8].mxu0 %vm414_vm2, %v1982_v52 }
 0xc46   :  { %v2390_v49 = vpop.f32.mrb[8].mxu0 }
 0xc47   :  { %v2071_v50 = vadd.f32 %v2390_v49, %v2938_v14  ;;  %v2059_v53 = vpop.f32.mrb[9].mxu0 }
 0xc48   :  { %v2070_v54 = vadd.f32 %v2059_v53, %v2933_v11 }
 0xc49   :  { %v2075_v55 = vsel %vm158_vm0, %v2071_v50, 0.0 }
 0xc4a   :  { %2076 = vadd.xlane.f32.xlu0 %v2075_v55  ;;  %v2072_v56 = vsel %vm158_vm0, %v2070_v54, 0.0 }
 0xc4b   :  { %2073 = vadd.xlane.f32.xlu1 %v2072_v56 }
 0xcd7   :  { %v2077_v57 = vpop.xlane.xlu0 %2076 }
 0xcd8   :  { %v2080_v58 = vmul.f32 0.03125, %v2077_v57  ;;  %v2074_v59 = vpop.xlane.xlu1 %2073 }
 0xcd9   :  { %v2079_v60 = vmul.f32 0.03125, %v2074_v59 }
 0xcda   :  { %v2082_v61 = vsub.f32 %v2071_v50, %v2080_v58 }
 0xcdb   :  { %v2081_v62 = vsub.f32 %v2070_v54, %v2079_v60 }
 0xcdc   :  { %v2084_v0 = vmul.f32 %v2082_v61, %v2082_v61 }
 0xcdd   :  { %v2083_v1 = vmul.f32 %v2081_v62, %v2081_v62 }
 0xcde   :  { %v2088_v3 = vsel %vm158_vm0, %v2084_v0, 0.0 }
 0xcdf   :  { %2089 = vadd.xlane.f32.xlu1 %v2088_v3  ;;  %v2085_v14 = vsel %vm158_vm0, %v2083_v1, 0.0 }
 0xce0   :  { %2086 = vadd.xlane.f32.xlu0 %v2085_v14 }
 0xce1   :  { %2661 = shalt.err (!%p2658_p12)
}
 0xce2   :  { %s2662_s22 = scalar_lea.hbm %s3176_s11, 1024 }
 0xce3   :  { %p2663_p13 = scmp.ne.s32.totalorder %s3176_s11, %s2662_s22  ;;  %p2666_p0 = scmp.lt.u32.totalorder %s2662_s22, %s3176_s11 }
 0xce5   :  { %p2668_p1 = pnand %p2666_p0, %p2663_p13 }
 0xce7   :  { %2671 = shalt.err (!%p2668_p1)
}
 0xce8   :  { %2142 = dma.vmem_to_hbm [thread:$0]  %s2137_s3, 1024, %s3176_s11, [#allocation18], %s2710_s29, %s2710_s29, %s2711_s30  }
 0xce9   :  { %v2194_v63 = vld [vmem:[%s3173_s8] ss:$0 sm:$0xff]  ;;  %s2724_s11 = smov [#allocation16]  }
 0xcea   :  { %v2195_v12 = vld [vmem:[%s3174_s9] ss:$0 sm:$0xff]  ;;  %s2124_s5 = sshll.u32 %s2724_s11, 4  ;;  %s2125_s5 = int_to_ptr.vmem [resolvable:$true] %s2124_s5 }
 0xceb   :  { %s2672_s25 = scalar_lea.vmem %s2125_s5, 256  ;;  %p2677_p3 = scmp.lt.s32.totalorder %s2125_s5, %s2125_s5 }
 0xcec   :  { %p2673_p2 = scmp.ne.s32.totalorder %s2125_s5, %s2672_s25  ;;  %p2678_p4 = scmp.lt.s32.totalorder %s2672_s25, %s2672_s25 }
 0xcee   :  { %p2679_p5 = por %p2678_p4, %p2677_p3 }
 0xcf0   :  { %p2680_p6 = pnand %p2679_p5, %p2673_p2 }
 0xd6c   :  { %v2090_v11 = vpop.xlane.xlu1 %2089 }
 0xd6d   :  { %v2092_v4 = vmul.f32 0.03125, %v2090_v11  ;;  %v2087_v22 = vpop.xlane.xlu0 %2086 }
 0xd6e   :  { %v2091_v5 = vmul.f32 0.03125, %v2087_v22 }
 0xd6f   :  { %v2094_v6 = vadd.f32 1e-05, %v2092_v4 }
 0xd70   :  { %v2093_v7 = vadd.f32 1e-05, %v2091_v5 }
 0xd71   :  { %2470 = vrsqrt.f32 %v2094_v6 }
 0xd72   :  { %2472 = vrsqrt.f32 %v2093_v7 }
 0xd7b   :  { %v2471_v8 = vpop.eup %2470 }
 0xd7c   :  { %v2473_v9 = vpop.eup %2472  ;;  %v2098_v2 = vmul.f32 %v2471_v8, %v2082_v61 }
 0xd7d   :  { %v2097_v10 = vmul.f32 %v2473_v9, %v2081_v62 }
 0xd7e   :  { %v2107_v13 = vmul.f32 %v2194_v63, %v2098_v2 }
 0xd7f   :  { %v2106_v15 = vmul.f32 %v2194_v63, %v2097_v10 }
 0xd80   :  { %v2116_v17 = vadd.f32 %v2195_v12, %v2107_v13 }
 0xd81   :  { %v2115_v19 = vadd.f32 %v2195_v12, %v2106_v15 }
 0xd82   :  { %2118 = vst.msk [vmem:[#allocation16 + $0x8] sm:$0xff] %vm158_vm0, %v2116_v17 }
 0xd83   :  { %2117 = vst.msk [vmem:[#allocation16] sm:$0xff] %vm158_vm0, %v2115_v19 }
 0xd84   :  { %2683 = shalt.err (!%p2680_p6)
}
 0xd85   :  { %s2684_s12 = scalar_lea.hbm %s3175_s10, 256 }
 0xd86   :  { %p2685_p7 = scmp.ne.s32.totalorder %s3175_s10, %s2684_s12  ;;  %p2688_p8 = scmp.lt.u32.totalorder %s2684_s12, %s3175_s10 }
 0xd88   :  { %p2690_p9 = pnand %p2688_p8, %p2685_p7 }
 0xd8a   :  { %2693 = shalt.err (!%p2690_p9)
}
 0xd8b   :  { %2130 = dma.vmem_to_hbm [thread:$0]  %s2125_s5, 256, %s3175_s10, [#allocation4], %s2710_s29, %s2710_s29, %s2711_s30  }
 0xd8c   :  { %2704 = dma.done.wait [#allocation4], 256  }
 0xd8d   :  { %2705 = vsyncadd [#allocation4], 4294967040 }
 0xd8e   :  { %2706 = dma.done.wait [#allocation18], 1024  }
 0xd8f   :  { %2707 = vsyncadd [#allocation18], 4294966272 }
 0xd90   :  { %2149 = vsyncpa [#allocation3], 1 }
 0xd91   :  { %2150 = vsyncpa [#allocation6], 1 }
 0xd92   :  { %2151 = vsyncpa [#allocation9], 1 }
 0xd93   :  { %2152 = vsyncpa [#allocation12], 1 }
 0xd94   :  { %2153 = vsyncpa [#allocation15], 1 }
 0xd95   :  { %2154 = vsyncpa [#allocation4], 1 }
 0xd96   :  { %2155 = vsyncpa [#allocation18], 1 }

</bundles_post_ra>
